<compile_context>
chip_gen: v7x
topology: tpu7x:2x2x1
jax: 0.10.0
libtpu: 0.0.40
codegen_flags: <defaults>
</compile_context>

<pallas_src>
import functools

import jax
import jax.numpy as jnp
from jax import lax
from jax.experimental import pallas as pl
from jax.experimental.pallas import tpu as pltpu

_LANE = 128


def _focal_loss_kernel(pred_ref, label_ref, out_ref, acc_w_ref, acc_c_ref, *,
                       n_actual, class_num, alpha, gamma, smoothing):
    pid = pl.program_id(0)
    n_tiles = pl.num_programs(0)

    @pl.when(pid == 0)
    def _init():
        acc_w_ref[...] = jnp.zeros_like(acc_w_ref)
        acc_c_ref[...] = jnp.zeros_like(acc_c_ref)

    pred = pred_ref[...].astype(jnp.float32)    # (C, T): class on sublanes, batch on lanes
    label = label_ref[...]                      # (1, T) int32
    c, tile_n = pred.shape

    # Validity mask for batch-padding columns.
    col = lax.broadcasted_iota(jnp.int32, (1, tile_n), dimension=1)
    valid = (pid * tile_n + col) < n_actual     # (1, T) bool

    # log_softmax pieces along the class (sublane) axis.
    m = jnp.max(pred, axis=0, keepdims=True)                        # (1, T)
    shifted = pred - m                                              # (C, T)
    sumexp = jnp.sum(jnp.exp(shifted), axis=0, keepdims=True)       # (1, T)
    logsumexp = jnp.log(sumexp)                                     # (1, T)

    # True-class shifted logit via one-hot mask on sublanes (no full softmax,
    # no smoothed one-hot materialization).
    cls = lax.broadcasted_iota(jnp.int32, (c, tile_n), dimension=0)
    shifted_true = jnp.sum(jnp.where(cls == label, shifted, 0.0),
                           axis=0, keepdims=True)                   # (1, T)
    logp_true = shifted_true - logsumexp                            # (1, T)
    p_true = jnp.exp(logp_true)                                     # softmax prob of label class

    # Smoothed CE, algebraically:
    #   ce = off_w * sum_c log_prob + (on_w - off_w) * log_prob[true]
    off_w = smoothing / (class_num - 1)
    on_w = 1.0 - smoothing
    rowsum_logprob = (jnp.sum(shifted, axis=0, keepdims=True)
                      - jnp.float32(c) * logsumexp)                 # (1, T)
    ce = (jnp.float32(off_w) * rowsum_logprob
          + jnp.float32(on_w - off_w) * logp_true)                  # (1, T)

    # alpha where label == 1, else (1 - alpha) -- faithful to the PyTorch module.
    alpha_vec = jnp.where(label == 1, jnp.float32(alpha), jnp.float32(1.0 - alpha))

    # Focal weight; clamp the base so p_true rounding slightly above 1 cannot
    # produce NaN, and avoid jnp.power (log+exp on EUP) for common gammas.
    base = jnp.maximum(0.0, 1.0 - p_true)
    g = float(gamma)
    if g == 2.0:
        focal_w = base * base
    elif g == 1.0:
        focal_w = base
    elif g == 0.0:
        focal_w = jnp.ones_like(base)
    else:
        focal_w = jnp.power(base, jnp.float32(g))

    zero = jnp.float32(0.0)
    acc_w_ref[...] += jnp.where(valid, focal_w, zero)
    acc_c_ref[...] += jnp.where(valid, -alpha_vec * ce, zero)

    @pl.when(pid == n_tiles - 1)
    def _finalize():
        s1 = jnp.sum(acc_w_ref[...])
        s2 = jnp.sum(acc_c_ref[...])
        loss = s1 * s2 / jnp.float32(n_actual * n_actual)
        out_ref[...] = jnp.reshape(loss, (1, 1))


def focal_loss_with_label_smooth(pred, label, *, class_num=2, alpha=0.25,
                                 gamma=2.0, smoothing=0.1, tile_n=None):
    if class_num < 2:
        raise ValueError("class_num must be >= 2 (label smoothing divides by class_num - 1)")
    n, c = pred.shape

    # Lane-dense layout: batch on lanes, classes on sublanes.
    pred_t = jnp.transpose(pred)                       # (C, N)
    label2d = label.reshape(1, n).astype(jnp.int32)    # (1, N)

    # Tile the batch axis. Target ~1 MiB of (sublane-padded) VMEM per pred tile
    # buffer so 2x double-buffered tiles + scratch stay well under the scoped
    # VMEM defaults on every generation (16 MiB v5e, 32 MiB v6e/v7x).
    if tile_n is None:
        padded_c = max(8, ((c + 7) // 8) * 8)
        tile_n = (1 << 20) // (padded_c * 4)
        tile_n = max(_LANE, (tile_n // _LANE) * _LANE)
    n_pad_min = ((n + _LANE - 1) // _LANE) * _LANE
    tile_n = min(tile_n, n_pad_min)

    n_tiles = -(-n // tile_n)
    n_pad = n_tiles * tile_n
    if n_pad != n:
        pred_t = jnp.pad(pred_t, ((0, 0), (0, n_pad - n)))
        label2d = jnp.pad(label2d, ((0, 0), (0, n_pad - n)))

    kernel = functools.partial(
        _focal_loss_kernel, n_actual=n, class_num=class_num,
        alpha=alpha, gamma=gamma, smoothing=smoothing)

    cost = pl.CostEstimate(
        flops=10 * n * c,
        transcendentals=n * c + 2 * n,
        bytes_accessed=n * c * pred.dtype.itemsize + n * 4 + 4)

    out = pl.pallas_call(
        kernel,
        out_shape=jax.ShapeDtypeStruct((1, 1), jnp.float32),
        grid_spec=pltpu.PrefetchScalarGridSpec(
            num_scalar_prefetch=0,
            grid=(n_tiles,),
            in_specs=[
                pl.BlockSpec((c, tile_n), lambda i: (0, i)),
                pl.BlockSpec((1, tile_n), lambda i: (0, i)),
            ],
            out_specs=pl.BlockSpec((1, 1), lambda i: (0, 0)),
            scratch_shapes=[
                pltpu.VMEM((1, tile_n), jnp.float32),   # sum_i (1-p_i)^gamma partials
                pltpu.VMEM((1, tile_n), jnp.float32),   # sum_j -alpha_j*ce_j partials
            ]),
        compiler_params=pltpu.CompilerParams(
            dimension_semantics=("arbitrary",),         # reduction into resident accumulators
            vmem_limit_bytes=32 * 1024 * 1024),
        cost_estimate=cost,
    )(pred_t, label2d)
    return out[0, 0]


def _reference(pred, label, *, class_num=2, alpha=0.25, gamma=2.0,
               smoothing=0.1):
    """Pure-JAX transcription of the PyTorch forward (for sanity check)."""
    pred = pred.astype(jnp.float32)
    label = label.reshape(-1)
    one_hot = jax.nn.one_hot(label, pred.shape[1], dtype=jnp.float32)
    one_hot = one_hot * (1 - smoothing) + (1 - one_hot) * smoothing / (class_num - 1)
    log_prob = jax.nn.log_softmax(pred, axis=1)
    ce = jnp.sum(one_hot * log_prob, axis=1)                      # (N,)
    p = jax.nn.softmax(pred, axis=1)
    mask = jax.nn.one_hot(label, pred.shape[1], dtype=jnp.float32)
    probs = jnp.sum(p * mask, axis=1).reshape(-1, 1)              # (N,1)
    alpha_v = jnp.where(label == 1, alpha, 1 - alpha)             # (N,)
    batch_loss = -alpha_v * jnp.power(1 - probs, gamma) * ce      # (N,N)
    return jnp.mean(batch_loss)


if __name__ == "__main__":
    key = jax.random.PRNGKey(0)
    k1, k2, k3, k4 = jax.random.split(key, 4)

    # Case 1: tiny batch (single tile, padded lanes).
    N1, C1 = 8, 2
    pred1 = jax.random.normal(k1, (N1, C1), dtype=jnp.float32)
    label1 = jax.random.randint(k2, (N1,), 0, C1, dtype=jnp.int32)
    loss1 = jax.block_until_ready(focal_loss_with_label_smooth(pred1, label1))
    ref1 = _reference(pred1, label1)
    assert jnp.allclose(loss1, ref1, atol=1e-5, rtol=1e-4), (loss1, ref1)

    # Case 2: multi-tile grid with batch padding (forces accumulator path).
    N2, C2 = 300, 2
    pred2 = jax.random.normal(k3, (N2, C2), dtype=jnp.float32)
    label2 = jax.random.randint(k4, (N2,), 0, C2, dtype=jnp.int32)
    loss2 = jax.block_until_ready(
        focal_loss_with_label_smooth(pred2, label2, tile_n=128))
    ref2 = _reference(pred2, label2)
    assert jnp.allclose(loss2, ref2, atol=1e-5, rtol=1e-4), (loss2, ref2)

    print("KERNEL_OK")
</pallas_src>

<mosaic_0001>
module attributes {stable_mosaic.version = 11 : i64} {
  func.func @_focal_loss_kernel(%arg0: i32, %arg1: memref<2x128xf32, #tpu.memory_space<vmem>>, %arg2: memref<1x128xi32, #tpu.memory_space<vmem>>, %arg3: memref<1x1xf32, #tpu.memory_space<vmem>>, %arg4: memref<1x128xf32, #tpu.memory_space<vmem>>, %arg5: memref<1x128xf32, #tpu.memory_space<vmem>>) attributes {dimension_semantics = [#tpu.dimension_semantics<arbitrary>], iteration_bounds = array<i64: 1>, scalar_prefetch = 0 : i64, scratch_operands = 2 : i64, tpu.core_type = #tpu.core_type<tc>, window_params = [{transform_indices = @transform_0, window_bounds = array<i64: 2, 128>}, {transform_indices = @transform_1, window_bounds = array<i64: 1, 128>}, {pipeline_mode = #tpu.pipeline_mode<synchronous>, transform_indices = @transform_2, window_bounds = array<i64: 1, 1>}]} {
    %c0_i32 = arith.constant 0 : i32
    %0 = arith.cmpi eq, %arg0, %c0_i32 : i32
    %1 = arith.extui %0 : i1 to i32
    %c0_i32_0 = arith.constant 0 : i32
    %2 = arith.cmpi ne, %1, %c0_i32_0 : i32
    scf.if %2 {
      %cst_28 = arith.constant 0.000000e+00 : f32
      %64 = vector.broadcast %cst_28 : f32 to vector<1x128xf32>
      %c0_29 = arith.constant 0 : index
      %c0_30 = arith.constant 0 : index
      %65 = vector.load %arg4[%c0_29, %c0_30] : memref<1x128xf32, #tpu.memory_space<vmem>>, vector<1x128xf32>
      tpu.vector_store %arg4[%c0_29, %c0_30], %64 {strides = array<i32>} : memref<1x128xf32, #tpu.memory_space<vmem>>, vector<1x128xf32>,
      %cst_31 = arith.constant 0.000000e+00 : f32
      %66 = vector.broadcast %cst_31 : f32 to vector<1x128xf32>
      %c0_32 = arith.constant 0 : index
      %c0_33 = arith.constant 0 : index
      %67 = vector.load %arg5[%c0_32, %c0_33] : memref<1x128xf32, #tpu.memory_space<vmem>>, vector<1x128xf32>
      tpu.vector_store %arg5[%c0_32, %c0_33], %66 {strides = array<i32>} : memref<1x128xf32, #tpu.memory_space<vmem>>, vector<1x128xf32>,
    } else {
    }
    %c0 = arith.constant 0 : index
    %c0_1 = arith.constant 0 : index
    %3 = vector.load %arg1[%c0, %c0_1] : memref<2x128xf32, #tpu.memory_space<vmem>>, vector<2x128xf32>
    %c0_2 = arith.constant 0 : index
    %c0_3 = arith.constant 0 : index
    %4 = vector.load %arg2[%c0_2, %c0_3] : memref<1x128xi32, #tpu.memory_space<vmem>>, vector<1x128xi32>
    %5 = tpu.iota {dimensions = array<i32: 1>} : vector<1x128xi32>
    %c128_i32 = arith.constant 128 : i32
    %6 = arith.muli %arg0, %c128_i32 : i32
    %7 = vector.broadcast %6 : i32 to vector<1x128xi32>
    %8 = arith.addi %7, %5 : vector<1x128xi32>
    %c8_i32 = arith.constant 8 : i32
    %9 = vector.broadcast %c8_i32 : i32 to vector<1x128xi32>
    %10 = arith.cmpi slt, %8, %9 : vector<1x128xi32>
    %cst = arith.constant dense<0xFF800000> : vector<128xf32>
    %11 = vector.multi_reduction <maximumf>, %3, %cst [0] : vector<2x128xf32> to vector<128xf32>
    %12 = vector.shape_cast %11 : vector<128xf32> to vector<1x128xf32>
    %13 = vector.broadcast %12 : vector<1x128xf32> to vector<2x128xf32>
    %14 = arith.subf %3, %13 : vector<2x128xf32>
    %15 = math.exp %14 : vector<2x128xf32>
    %cst_4 = arith.constant dense<0.000000e+00> : vector<128xf32>
    %16 = vector.multi_reduction <add>, %15, %cst_4 [0] : vector<2x128xf32> to vector<128xf32>
    %17 = vector.shape_cast %16 : vector<128xf32> to vector<1x128xf32>
    %18 = math.log %17 : vector<1x128xf32>
    %19 = tpu.iota {dimensions = array<i32: 0>} : vector<2x128xi32>
    %20 = vector.broadcast %4 : vector<1x128xi32> to vector<2x128xi32>
    %21 = arith.cmpi eq, %19, %20 : vector<2x128xi32>
    %cst_5 = arith.constant 0.000000e+00 : f32
    %22 = vector.broadcast %cst_5 : f32 to vector<2x128xf32>
    %23 = arith.select %21, %14, %22 : vector<2x128xi1>, vector<2x128xf32>
    %cst_6 = arith.constant dense<0.000000e+00> : vector<128xf32>
    %24 = vector.multi_reduction <add>, %23, %cst_6 [0] : vector<2x128xf32> to vector<128xf32>
    %25 = vector.shape_cast %24 : vector<128xf32> to vector<1x128xf32>
    %26 = arith.subf %25, %18 : vector<1x128xf32>
    %27 = math.exp %26 : vector<1x128xf32>
    %cst_7 = arith.constant dense<0.000000e+00> : vector<128xf32>
    %28 = vector.multi_reduction <add>, %14, %cst_7 [0] : vector<2x128xf32> to vector<128xf32>
    %29 = vector.shape_cast %28 : vector<128xf32> to vector<1x128xf32>
    %cst_8 = arith.constant 2.000000e+00 : f32
    %30 = vector.broadcast %cst_8 : f32 to vector<1x128xf32>
    %31 = arith.mulf %30, %18 : vector<1x128xf32>
    %32 = arith.subf %29, %31 : vector<1x128xf32>
    %cst_9 = arith.constant 1.000000e-01 : f32
    %33 = vector.broadcast %cst_9 : f32 to vector<1x128xf32>
    %34 = arith.mulf %33, %32 : vector<1x128xf32>
    %cst_10 = arith.constant 8.000000e-01 : f32
    %35 = vector.broadcast %cst_10 : f32 to vector<1x128xf32>
    %36 = arith.mulf %35, %26 : vector<1x128xf32>
    %37 = arith.addf %34, %36 : vector<1x128xf32>
    %c1_i32 = arith.constant 1 : i32
    %38 = vector.broadcast %c1_i32 : i32 to vector<1x128xi32>
    %39 = arith.cmpi eq, %4, %38 : vector<1x128xi32>
    %cst_11 = arith.constant 2.500000e-01 : f32
    %cst_12 = arith.constant 7.500000e-01 : f32
    %40 = vector.broadcast %cst_11 : f32 to vector<1x128xf32>
    %41 = vector.broadcast %cst_12 : f32 to vector<1x128xf32>
    %42 = arith.select %39, %40, %41 : vector<1x128xi1>, vector<1x128xf32>
    %cst_13 = arith.constant 1.000000e+00 : f32
    %43 = vector.broadcast %cst_13 : f32 to vector<1x128xf32>
    %44 = arith.subf %43, %27 : vector<1x128xf32>
    %cst_14 = arith.constant 0.000000e+00 : f32
    %45 = vector.broadcast %cst_14 : f32 to vector<1x128xf32>
    %46 = arith.maximumf %45, %44 : vector<1x128xf32>
    %47 = arith.mulf %46, %46 : vector<1x128xf32>
    %c0_15 = arith.constant 0 : index
    %c0_16 = arith.constant 0 : index
    %48 = vector.load %arg4[%c0_15, %c0_16] : memref<1x128xf32, #tpu.memory_space<vmem>>, vector<1x128xf32>
    %cst_17 = arith.constant 0.000000e+00 : f32
    %49 = vector.broadcast %cst_17 : f32 to vector<1x128xf32>
    %50 = arith.select %10, %47, %49 : vector<1x128xi1>, vector<1x128xf32>
    %51 = arith.addf %48, %50 : vector<1x128xf32>
    %c0_18 = arith.constant 0 : index
    %c0_19 = arith.constant 0 : index
    %52 = vector.load %arg4[%c0_18, %c0_19] : memref<1x128xf32, #tpu.memory_space<vmem>>, vector<1x128xf32>
    tpu.vector_store %arg4[%c0_18, %c0_19], %51 {strides = array<i32>} : memref<1x128xf32, #tpu.memory_space<vmem>>, vector<1x128xf32>,
    %c0_20 = arith.constant 0 : index
    %c0_21 = arith.constant 0 : index
    %53 = vector.load %arg5[%c0_20, %c0_21] : memref<1x128xf32, #tpu.memory_space<vmem>>, vector<1x128xf32>
    %cst_22 = arith.constant 0.000000e+00 : f32
    %54 = vector.broadcast %cst_22 : f32 to vector<1x128xf32>
    %55 = arith.subf %54, %42 : vector<1x128xf32>
    %56 = arith.mulf %55, %37 : vector<1x128xf32>
    %cst_23 = arith.constant 0.000000e+00 : f32
    %57 = vector.broadcast %cst_23 : f32 to vector<1x128xf32>
    %58 = arith.select %10, %56, %57 : vector<1x128xi1>, vector<1x128xf32>
    %59 = arith.addf %53, %58 : vector<1x128xf32>
    %c0_24 = arith.constant 0 : index
    %c0_25 = arith.constant 0 : index
    %60 = vector.load %arg5[%c0_24, %c0_25] : memref<1x128xf32, #tpu.memory_space<vmem>>, vector<1x128xf32>
    tpu.vector_store %arg5[%c0_24, %c0_25], %59 {strides = array<i32>} : memref<1x128xf32, #tpu.memory_space<vmem>>, vector<1x128xf32>,
    %c0_i32_26 = arith.constant 0 : i32
    %61 = arith.cmpi eq, %arg0, %c0_i32_26 : i32
    %62 = arith.extui %61 : i1 to i32
    %c0_i32_27 = arith.constant 0 : i32
    %63 = arith.cmpi ne, %62, %c0_i32_27 : i32
    scf.if %63 {
      %c0_28 = arith.constant 0 : index
      %c0_29 = arith.constant 0 : index
      %64 = vector.load %arg4[%c0_28, %c0_29] : memref<1x128xf32, #tpu.memory_space<vmem>>, vector<1x128xf32>
      %65 = vector.shape_cast %64 : vector<1x128xf32> to vector<1x1x128xf32>
      %cst_30 = arith.constant dense<0.000000e+00> : vector<1xf32>
      %66 = vector.multi_reduction <add>, %65, %cst_30 [1, 2] : vector<1x1x128xf32> to vector<1xf32>
      %67 = vector.shape_cast %66 : vector<1xf32> to vector<1x1x1xf32>
      %68 = vector.extract %67[0, 0, 0] : f32 from vector<1x1x1xf32>
      %c0_31 = arith.constant 0 : index
      %c0_32 = arith.constant 0 : index
      %69 = vector.load %arg5[%c0_31, %c0_32] : memref<1x128xf32, #tpu.memory_space<vmem>>, vector<1x128xf32>
      %70 = vector.shape_cast %69 : vector<1x128xf32> to vector<1x1x128xf32>
      %cst_33 = arith.constant dense<0.000000e+00> : vector<1xf32>
      %71 = vector.multi_reduction <add>, %70, %cst_33 [1, 2] : vector<1x1x128xf32> to vector<1xf32>
      %72 = vector.shape_cast %71 : vector<1xf32> to vector<1x1x1xf32>
      %73 = vector.extract %72[0, 0, 0] : f32 from vector<1x1x1xf32>
      %74 = arith.mulf %68, %73 : f32
      %cst_34 = arith.constant 6.400000e+01 : f32
      %75 = arith.divf %74, %cst_34 : f32
      %76 = vector.broadcast %75 : f32 to vector<1x1xf32>
      %c0_35 = arith.constant 0 : index
      %c0_36 = arith.constant 0 : index
      %77 = vector.load %arg3[%c0_35, %c0_36] : memref<1x1xf32, #tpu.memory_space<vmem>>, vector<1x1xf32>
      tpu.vector_store %arg3[%c0_35, %c0_36], %76 {strides = array<i32>} : memref<1x1xf32, #tpu.memory_space<vmem>>, vector<1x1xf32>,
    } else {
    }
    return
  }
  func.func @transform_0(%arg0: i32) -> (i32, i32) {
    %c0_i32 = arith.constant 0 : i32
    %c0_i32_0 = arith.constant 0 : i32
    return %c0_i32, %arg0 : i32, i32
  }
  func.func @transform_1(%arg0: i32) -> (i32, i32) {
    %c0_i32 = arith.constant 0 : i32
    %c0_i32_0 = arith.constant 0 : i32
    return %c0_i32, %arg0 : i32, i32
  }
  func.func @transform_2(%arg0: i32) -> (i32, i32) {
    %c0_i32 = arith.constant 0 : i32
    %c0_i32_0 = arith.constant 0 : i32
    %c0_i32_1 = arith.constant 0 : i32
    return %c0_i32, %c0_i32_0 : i32, i32
  }
}

</mosaic_0001>

<bundles_post_ra>
// kernel: tpu_custom_call.1
= control target key start
LH: loop header
LB: loop body
LE: loop exit
PB: predicated region body
PF: predicated region fallthrough
CT: control target
= control target key end

     0   :  { %7 = vsyncpa [#allocation5], 0  ;;  %s263_s0 = inlined_call_operand.hbm [shape: f32[2,128], index: 0, kind: input, shape index: {}]   ;;  %s264_s1 = inlined_call_operand.vmem [shape: s32[1,128], index: 1, kind: input, shape index: {}]   ;;  %s265_s2 = inlined_call_operand.hbm [shape: f32[1,1], index: 2, kind: output, shape index: {}]  }
   0x1   :  { %8 = vsyncpa [#allocation6], 0  ;;  %s213_s9 = smov [#allocation4]   ;;  %s165_s13 = scalar_lea.hbm %s263_s0, 32 }
   0x2   :  { %s15_s10 = sshll.u32 %s213_s9, 4  ;;  %p166_p0 = scmp.ne.s32.totalorder %s263_s0, %s165_s13  ;;  %s16_s10 = int_to_ptr.vmem [resolvable:$true] %s15_s10 }
   0x3   :  { %p169_p1 = scmp.lt.u32.totalorder %s165_s13, %s263_s0 }
   0x5   :  { %p171_p2 = pnand %p169_p1, %p166_p0 }
   0x7   :  { %174 = shalt.err (!%p171_p2)
}
   0x8   :  { %s175_s18 = scalar_lea.vmem %s16_s10, 32  ;;  %p180_p4 = scmp.lt.s32.totalorder %s16_s10, %s16_s10 }
   0x9   :  { %p176_p3 = scmp.ne.s32.totalorder %s16_s10, %s175_s18  ;;  %p181_p5 = scmp.lt.s32.totalorder %s175_s18, %s175_s18 }
   0xb   :  { %p182_p6 = por %p181_p5, %p180_p4 }
   0xd   :  { %p183_p7 = pnand %p182_p6, %p176_p3 }
   0xf   :  { %186 = shalt.err (!%p183_p7)
}
  0x10   :  { %18 = dma.hbm_to_vmem [thread:$0]  %s263_s0, 32, %s16_s10, [#allocation5]  }
  0x11   :  { %209 = dma.done.wait [#allocation5], 32  }
  0x12   :  { %210 = vsyncadd [#allocation5], 4294967264  ;;  %v214_v0 = vmov 0.0   ;;  %vm38_vm0 = vcmask 1041408   ;;  %v30_v1 = vld [vmem:[#allocation4] sm:$0x3]  ;;  %v32_v5 = vlaneseq }
  0x13   :  { %28 = vst [vmem:[#allocation2] sm:$0x1] %v214_v0  ;;  %29 = vst [vmem:[#allocation3] sm:$0x1] %v214_v0  ;;  %v39_v2 = vsel %vm38_vm0, %v30_v1, -inf  ;;  %v215_v43 = vmov 0.75  }
  0x14   :  { %v40_v3 = vrot.slane %v39_v2, 4  ;;  %v59_v9 = vshrl.u32 %v32_v5, 7  ;;  %v31_v13 = vld [vmem:[%s264_s1] sm:$0x1]  ;;  %v33_v50 = vand.u32 127, %v32_v5  ;;  %vm107_vm4 = vcmask 1040384  }
  0x15   :  { %vm88_vm2 = vcmp.eq.s32.totalorder %v31_v13, 1  ;;  %s216_s24 = smov [#allocation7]   ;;  %vm134_vm5 = vcmask 0  }
  0x16   :  { %v41_v4 = vmax.f32 %v39_v2, %v40_v3  ;;  %v62_v12 = vsub.s32 0, %v59_v9  ;;  %v89_v44 = vsel %vm88_vm2, 0.25, %v215_v43  ;;  %vm37_vm3 = vcmp.lt.s32.totalorder %v33_v50, 8  ;;  %s142_s25 = sshll.u32 %s216_s24, 4  ;;  %s143_s25 = int_to_ptr.vmem [resolvable:$true] %s142_s25 }
  0x17   :  { %v98_v49 = vsub.f32 0.0, %v89_v44  ;;  %s187_s27 = scalar_lea.vmem %s143_s25, 16  ;;  %s191_s28 = scalar_lea.vmem %s143_s25, 32 }
  0x18   :  { %v42_v6 = vrot.slane %v41_v4, 2  ;;  %v63_v15 = vrot.slane %v31_v13, %v62_v12  ;;  %p188_p8 = scmp.ne.s32.totalorder %s143_s25, %s187_s27  ;;  %p192_p9 = scmp.lt.s32.totalorder %s143_s25, %s143_s25 }
  0x19   :  { %p193_p10 = scmp.lt.s32.totalorder %s191_s28, %s187_s27 }
  0x1a   :  { %v43_v7 = vmax.f32 %v41_v4, %v42_v6  ;;  %vm64_vm1 = vcmp.eq.s32.totalorder %v59_v9, %v63_v15  ;;  %v97_v52 = vld [vmem:[#allocation3] sm:$0x1]  ;;  %v93_v60 = vld [vmem:[#allocation2] sm:$0x1] }
  0x1b   :  { %p194_p11 = por %p193_p10, %p192_p9 }
  0x1c   :  { %v44_v8 = vrot.slane %v43_v7, 1 }
  0x1d   :  { %p195_p12 = pnand %p194_p11, %p188_p8 }
  0x1e   :  { %v45_v10 = vmax.f32 %v43_v7, %v44_v8 }
  0x20   :  { %v46_v11 = vsub.f32 %v30_v1, %v45_v10 }
  0x22   :  { %v47_v14 = vmul.f32 1.442695, %v46_v11  ;;  %v65_v16 = vsel %vm64_vm1, %v46_v11, 0.0  ;;  %v76_v21 = vsel %vm38_vm0, %v46_v11, 0.0 }
  0x23   :  { %v66_v18 = vsel %vm38_vm0, %v65_v16, 0.0  ;;  %v77_v24 = vrot.slane %v76_v21, 4 }
  0x24   :  { %159 = vpow2.f32 %v47_v14  ;;  %v67_v22 = vrot.slane %v66_v18, 4 }
  0x25   :  { %v78_v28 = vadd.f32 %v77_v24, %v76_v21 }
  0x26   :  { %v68_v26 = vadd.f32 %v67_v22, %v66_v18 }
  0x27   :  { %v79_v32 = vrot.slane %v78_v28, 2 }
  0x28   :  { %v69_v30 = vrot.slane %v68_v26, 2 }
  0x29   :  { %v80_v34 = vadd.f32 %v79_v32, %v78_v28 }
  0x2a   :  { %v70_v33 = vadd.f32 %v69_v30, %v68_v26 }
  0x2b   :  { %v81_v36 = vrot.slane %v80_v34, 1 }
  0x2c   :  { %v71_v35 = vrot.slane %v70_v33, 1 }
  0x2d   :  { %v82_v40 = vadd.f32 %v81_v36, %v80_v34 }
  0x2e   :  { %v160_v17 = vpop.eup %159  ;;  %v72_v37 = vadd.f32 %v71_v35, %v70_v33 }
  0x2f   :  { %v49_v19 = vsel %vm38_vm0, %v160_v17, 0.0 }
  0x30   :  { %v50_v20 = vrot.slane %v49_v19, 4 }
  0x32   :  { %v51_v23 = vadd.f32 %v50_v20, %v49_v19 }
  0x34   :  { %v52_v25 = vrot.slane %v51_v23, 2 }
  0x36   :  { %v53_v27 = vadd.f32 %v52_v25, %v51_v23 }
  0x38   :  { %v54_v29 = vrot.slane %v53_v27, 1 }
  0x3a   :  { %v55_v31 = vadd.f32 %v54_v29, %v53_v27 }
  0x3c   :  { %161 = vlog2.f32 %v55_v31 }
  0x46   :  { %v162_v38 = vpop.eup %161 }
  0x47   :  { %v57_v39 = vmul.f32 0.6931472, %v162_v38 }
  0x49   :  { %v73_v41 = vsub.f32 %v72_v37, %v57_v39  ;;  %v83_v42 = vmul.f32 2.0, %v57_v39 }
  0x4b   :  { %v74_v45 = vmul.f32 1.442695, %v73_v41  ;;  %v84_v46 = vsub.f32 %v82_v40, %v83_v42  ;;  %v86_v47 = vmul.f32 0.8, %v73_v41 }
  0x4d   :  { %163 = vpow2.f32 %v74_v45  ;;  %v85_v48 = vmul.f32 0.1, %v84_v46 }
  0x4f   :  { %v87_v51 = vadd.f32 %v86_v47, %v85_v48 }
  0x51   :  { %v99_v53 = vmul.f32 %v98_v49, %v87_v51 }
  0x53   :  { %v100_v54 = vsel %vm37_vm3, %v99_v53, 0.0 }
  0x54   :  { %v101_v55 = vadd.f32 %v100_v54, %v97_v52 }
  0x56   :  { %102 = vst [vmem:[#allocation3] sm:$0x1] %v101_v55 }
  0x57   :  { %v164_v56 = vpop.eup %163 }
  0x58   :  { %v90_v57 = vsub.f32 1.0, %v164_v56 }
  0x5a   :  { %v91_v58 = vmax.f32 %v90_v57, 0.0 }
  0x5c   :  { %v92_v59 = vmul.f32 %v91_v58, %v91_v58 }
  0x5d   :  { %v118_v0 = vld [vmem:[#allocation3] sm:$0x1] }
  0x5e   :  { %v94_v61 = vsel %vm37_vm3, %v92_v59, 0.0  ;;  %v119_v2 = vsel %vm107_vm4, %v118_v0, 0.0 }
  0x5f   :  { %v95_v62 = vadd.f32 %v94_v61, %v93_v60 }
  0x61   :  { %96 = vst [vmem:[#allocation2] sm:$0x1] %v95_v62 }
  0x68   :  { %v106_v63 = vld [vmem:[#allocation2] sm:$0x1] }
  0x69   :  { %v108_v1 = vsel %vm107_vm4, %v106_v63, 0.0 }
  0x6a   :  { %109 = vadd.xlane.f32.xlu0 %v108_v1 }
  0x6e   :  { %120 = vadd.xlane.f32.xlu0 %v119_v2 }
  0xf7   :  { %v110_v3 = vpop.xlane.xlu0 %109 }
  0xf8   :  { %v111_v4 = vrot.slane %v110_v3, 4 }
  0xfa   :  { %v112_v5 = vadd.f32 %v111_v4, %v110_v3 }
  0xfb   :  { %v121_v6 = vpop.xlane.xlu0 %120 }
  0xfc   :  { %v113_v7 = vrot.slane %v112_v5, 2  ;;  %v122_v8 = vrot.slane %v121_v6, 4 }
  0xfe   :  { %v123_v9 = vadd.f32 %v122_v8, %v121_v6  ;;  %v114_v10 = vadd.f32 %v113_v7, %v112_v5 }
 0x100   :  { %v124_v11 = vrot.slane %v123_v9, 2  ;;  %v115_v12 = vrot.slane %v114_v10, 1 }
 0x102   :  { %v125_v13 = vadd.f32 %v124_v11, %v123_v9  ;;  %v116_v14 = vadd.f32 %v115_v12, %v114_v10 }
 0x104   :  { %151 = vpush %v116_v14  ;;  %v126_v15 = vrot.slane %v125_v13, 1 }
 0x106   :  { %v127_v16 = vadd.f32 %v126_v15, %v125_v13 }
 0x108   :  { %153 = vpush %v127_v16 }
 0x135   :  { %s152_s1 = spop %151 }
 0x139   :  { %s154_s22 = spop %153 }
 0x13a   :  { %s129_s23 = smul.f32 %s154_s22, %s152_s1 }
 0x13c   :  { %s132_s26 = smul.f32 0.015625, %s129_s23 }
 0x13e   :  { %v133_v17 = vstv %s132_s26 }
 0x13f   :  { %135 = vst.msk [vmem:[#allocation7] sm:$0x1] %vm134_vm5, %v133_v17 }
 0x140   :  { %198 = shalt.err (!%p195_p12)
}
 0x141   :  { %s199_s3 = scalar_lea.hbm %s265_s2, 16 }
 0x142   :  { %p200_p13 = scmp.ne.s32.totalorder %s265_s2, %s199_s3  ;;  %p203_p0 = scmp.lt.u32.totalorder %s199_s3, %s265_s2 }
 0x144   :  { %p205_p1 = pnand %p203_p0, %p200_p13 }
 0x146   :  { %208 = shalt.err (!%p205_p1)
}
 0x147   :  { %145 = dma.vmem_to_hbm [thread:$0]  %s143_s25, 16, %s265_s2, [#allocation6]  }
 0x148   :  { %211 = dma.done.wait [#allocation6], 16  }
 0x149   :  { %212 = vsyncadd [#allocation6], 4294967280 }
 0x14a   :  { %149 = vsyncpa [#allocation5], 1 }
 0x14b   :  { %150 = vsyncpa [#allocation6], 1 }

</bundles_post_ra>
